<compile_context>
chip_gen: v5e
topology: v5e:2x2
jax: 0.10.0
libtpu: 0.0.40
codegen_flags: <defaults>
</compile_context>

<pallas_src>
import jax
import jax.numpy as jnp
from jax.experimental import pallas as pl
from jax.experimental.pallas import tpu as pltpu

LN_EPS = 1e-5


def _ln_combine(f_ref, zq_tile, wcat_ref, bcat_ref, lnp_ref, out_ref):
    """Shared LayerNorm + fused-conv + combine for one (batch, time-tile) block.

    f_ref   : (1, TT, Cf) ref      zq_tile : (TT, Czq) array (time-aligned zq)
    wcat_ref: (Czq, 2*Cf) ref      bcat_ref: (1, 2*Cf) ref
    lnp_ref : (2, Cf) ref (row 0 = LN gamma, row 1 = LN beta)
    out_ref : (1, TT, Cf) ref
    """
    cf = f_ref.shape[-1]

    # ---- LayerNorm over the channel (lane) dim, one-pass f32 stats. ----
    f = f_ref[0].astype(jnp.float32)                        # (TT, Cf)
    inv_cf = 1.0 / cf
    mean = jnp.sum(f, axis=-1, keepdims=True) * inv_cf
    mean_sq = jnp.sum(f * f, axis=-1, keepdims=True) * inv_cf
    var = jnp.maximum(mean_sq - mean * mean, 0.0)
    inv = jax.lax.rsqrt(var + LN_EPS)
    gamma = lnp_ref[0:1, :].astype(jnp.float32)
    beta = lnp_ref[1:2, :].astype(jnp.float32)
    norm_f = (f - mean) * inv * gamma + beta                # (TT, Cf)

    # ---- Fused 1x1 convs: single MXU matmul with N = 2*Cf. ----
    yb = jnp.dot(zq_tile, wcat_ref[...],
                 preferred_element_type=jnp.float32)        # (TT, 2*Cf)
    yb = yb + bcat_ref[...].astype(jnp.float32)
    y = yb[:, :cf]
    b = yb[:, cf:]

    out_ref[0] = (norm_f * y + b).astype(out_ref.dtype)


def spatial_norm_kernel_gather(idx_ref, f_ref, zq_ref, wcat_ref, bcat_ref,
                               lnp_ref, out_ref):
    """Variant with in-kernel nearest upsample of the native-resolution zq.

    idx_ref : (TT, 1) int32  precomputed nearest-neighbour source row per step
    zq_ref  : (1, Tzq, Czq)  native-resolution zq (resident per batch)
    """
    tt = idx_ref.shape[0]
    tzq = zq_ref.shape[1]
    # One-hot selection matrix -> gather runs on the MXU (no XLU gather, no
    # HBM materialization of the upsampled zq).
    col = jax.lax.broadcasted_iota(jnp.int32, (tt, tzq), 1)
    onehot = (idx_ref[...] == col).astype(zq_ref.dtype)     # (TT, Tzq)
    zq_tile = jnp.dot(onehot, zq_ref[0],
                      preferred_element_type=jnp.float32
                      ).astype(zq_ref.dtype)                # (TT, Czq), exact
    _ln_combine(f_ref, zq_tile, wcat_ref, bcat_ref, lnp_ref, out_ref)


def spatial_norm_kernel_plain(f_ref, zq_ref, wcat_ref, bcat_ref, lnp_ref,
                              out_ref):
    """Fallback variant: zq already nearest-upsampled in the wrapper."""
    _ln_combine(f_ref, zq_ref[0], wcat_ref, bcat_ref, lnp_ref, out_ref)


def _choose_time_tile(T, bytes_per_row, budget_bytes=8 << 20):
    """Largest time tile whose streamed (double-buffered) blocks fit budget."""
    tt = budget_bytes // max(bytes_per_row, 1)
    if tt >= T:
        return T                                  # full T: exempt from 8-row rule
    return max(8, (tt // 8) * 8)                  # tiled: sublane dim % 8 == 0


def _nbytes(x):
    return x.size * jnp.dtype(x.dtype).itemsize


@jax.jit
def spatial_norm(f, zq, wy, by, wb, bb, gamma, beta):
    """f: [B, T, Cf], zq: [Tzq, B, Czq]  ->  [B, T, Cf]."""
    B, T, Cf = f.shape
    Tzq, Bz, Czq = zq.shape
    assert Bz == B

    f_itemsize = jnp.dtype(f.dtype).itemsize
    zq_itemsize = jnp.dtype(zq.dtype).itemsize

    # Native-resolution zq in [B, Tzq, Czq] (tiny transpose, << B*T*Czq).
    zq_btc = jnp.transpose(zq, (1, 0, 2))

    # Keep the native zq block resident in VMEM only if it is comfortably small
    # (double-buffered); otherwise fall back to the pre-gathered layout.
    zq_resident = 2 * Tzq * Czq * zq_itemsize
    gather_in_kernel = zq_resident <= (8 << 20)

    if gather_in_kernel:
        bytes_per_row = 2 * (2 * Cf * f_itemsize + 4)              # f + out + idx
    else:
        bytes_per_row = 2 * (2 * Cf * f_itemsize + Czq * zq_itemsize)
    TT = _choose_time_tile(T, bytes_per_row)
    nT = pl.cdiv(T, TT)
    T_pad = nT * TT

    # PyTorch mode='nearest': src = floor(dst * Tzq / T) (exact integer form).
    src_idx = jnp.minimum((jnp.arange(T_pad, dtype=jnp.int32) * Tzq) // T,
                          Tzq - 1)

    f_p = f if T_pad == T else jnp.pad(f, ((0, 0), (0, T_pad - T), (0, 0)))

    # Fuse the two 1x1 convs into one [Czq, 2*Cf] weight (single MXU push) and
    # pack the LayerNorm affine params into one (2, Cf) block (single DMA).
    wcat = jnp.concatenate([wy, wb], axis=-1)                # [Czq, 2*Cf]
    bcat = jnp.concatenate([by, bb], axis=-1)                # [1, 2*Cf]
    lnp = jnp.concatenate([gamma, beta], axis=0)             # [2, Cf]

    weights_bytes = _nbytes(wcat) + _nbytes(bcat) + _nbytes(lnp)
    streamed = TT * bytes_per_row
    vmem_limit = int(min(
        64 << 20,
        max(16 << 20,
            streamed + (zq_resident if gather_in_kernel else 0)
            + 2 * weights_bytes + (4 << 20))))

    cparams = pltpu.CompilerParams(
        dimension_semantics=("parallel", "parallel"),
        vmem_limit_bytes=vmem_limit)

    if gather_in_kernel:
        out = pl.pallas_call(
            spatial_norm_kernel_gather,
            out_shape=jax.ShapeDtypeStruct((B, T_pad, Cf), f.dtype),
            grid_spec=pltpu.PrefetchScalarGridSpec(
                num_scalar_prefetch=0,
                grid=(B, nT),
                in_specs=[
                    pl.BlockSpec((TT, 1), lambda b, t: (t, 0)),           # idx
                    pl.BlockSpec((1, TT, Cf), lambda b, t: (b, t, 0)),    # f
                    pl.BlockSpec((1, Tzq, Czq), lambda b, t: (b, 0, 0)),  # zq
                    pl.BlockSpec((Czq, 2 * Cf), lambda b, t: (0, 0)),     # wcat
                    pl.BlockSpec((1, 2 * Cf), lambda b, t: (0, 0)),       # bcat
                    pl.BlockSpec((2, Cf), lambda b, t: (0, 0)),           # lnp
                ],
                out_specs=pl.BlockSpec((1, TT, Cf), lambda b, t: (b, t, 0)),
            ),
            compiler_params=cparams,
        )(src_idx.reshape(T_pad, 1), f_p, zq_btc, wcat, bcat, lnp)
    else:
        # Fallback: pre-gather zq along time in the wrapper (previously
        # validated path), then a plain fused kernel.
        zq_bt = zq_btc[:, src_idx, :]                        # [B, T_pad, Czq]
        out = pl.pallas_call(
            spatial_norm_kernel_plain,
            out_shape=jax.ShapeDtypeStruct((B, T_pad, Cf), f.dtype),
            grid_spec=pltpu.PrefetchScalarGridSpec(
                num_scalar_prefetch=0,
                grid=(B, nT),
                in_specs=[
                    pl.BlockSpec((1, TT, Cf), lambda b, t: (b, t, 0)),
                    pl.BlockSpec((1, TT, Czq), lambda b, t: (b, t, 0)),
                    pl.BlockSpec((Czq, 2 * Cf), lambda b, t: (0, 0)),
                    pl.BlockSpec((1, 2 * Cf), lambda b, t: (0, 0)),
                    pl.BlockSpec((2, Cf), lambda b, t: (0, 0)),
                ],
                out_specs=pl.BlockSpec((1, TT, Cf), lambda b, t: (b, t, 0)),
            ),
            compiler_params=cparams,
        )(f_p, zq_bt, wcat, bcat, lnp)

    return out if T_pad == T else out[:, :T, :]


def reference(f, zq, wy, by, wb, bb, gamma, beta):
    B, T, Cf = f.shape
    Tzq = zq.shape[0]
    mean = f.mean(-1, keepdims=True)
    var = ((f - mean) ** 2).mean(-1, keepdims=True)
    nf = (f - mean) / jnp.sqrt(var + LN_EPS) * gamma[0] + beta[0]
    src_idx = (jnp.arange(T) * Tzq) // T
    zqi = jnp.transpose(zq, (1, 0, 2))[:, src_idx, :]
    y = zqi @ wy + by[0]
    b = zqi @ wb + bb[0]
    return nf * y + b


if __name__ == "__main__":
    B, T, Cf = 2, 16, 32      # batch, seq len, f_channels
    Tzq, Czq = 8, 8           # zq seq len, zq_channels

    key = jax.random.PRNGKey(0)
    k_f, k_zq, k_wy, k_by, k_wb, k_bb = jax.random.split(key, 6)

    f = jax.random.normal(k_f, (B, T, Cf), dtype=jnp.float32)
    zq = jax.random.normal(k_zq, (Tzq, B, Czq), dtype=jnp.float32)

    # Deterministic parameter init (Conv1d kernel-size 1 -> [Czq, Cf] matrices).
    wy = jax.random.normal(k_wy, (Czq, Cf), dtype=jnp.float32) * 0.1
    by = jax.random.normal(k_by, (1, Cf), dtype=jnp.float32) * 0.1
    wb = jax.random.normal(k_wb, (Czq, Cf), dtype=jnp.float32) * 0.1
    bb = jax.random.normal(k_bb, (1, Cf), dtype=jnp.float32) * 0.1
    gamma = jnp.ones((1, Cf), dtype=jnp.float32)   # LayerNorm weight
    beta = jnp.zeros((1, Cf), dtype=jnp.float32)   # LayerNorm bias

    out = spatial_norm(f, zq, wy, by, wb, bb, gamma, beta)
    out = jax.block_until_ready(out)

    ref = reference(f, zq, wy, by, wb, bb, gamma, beta)
    assert out.shape == (B, T, Cf)
    assert jnp.allclose(out, ref, atol=1e-4, rtol=1e-4), "mismatch vs reference"
    print("KERNEL_OK")
</pallas_src>

<mosaic_0001>
module attributes {stable_mosaic.version = 11 : i64} {
  func.func @spatial_norm_kernel_gather(%arg0: i32, %arg1: i32, %arg2: memref<16x1xi32, #tpu.memory_space<vmem>>, %arg3: memref<1x16x32xf32, #tpu.memory_space<vmem>>, %arg4: memref<1x8x8xf32, #tpu.memory_space<vmem>>, %arg5: memref<8x64xf32, #tpu.memory_space<vmem>>, %arg6: memref<1x64xf32, #tpu.memory_space<vmem>>, %arg7: memref<2x32xf32, #tpu.memory_space<vmem>>, %arg8: memref<1x16x32xf32, #tpu.memory_space<vmem>>) attributes {dimension_semantics = [#tpu.dimension_semantics<parallel>, #tpu.dimension_semantics<parallel>], iteration_bounds = array<i64: 2, 1>, scalar_prefetch = 0 : i64, scratch_operands = 0 : i64, tpu.core_type = #tpu.core_type<tc>, window_params = [{transform_indices = @transform_0, window_bounds = array<i64: 16, 1>}, {transform_indices = @transform_1, window_bounds = array<i64: 1, 16, 32>}, {transform_indices = @transform_2, window_bounds = array<i64: 1, 8, 8>}, {pipeline_mode = #tpu.pipeline_mode<synchronous>, transform_indices = @transform_3, window_bounds = array<i64: 8, 64>}, {pipeline_mode = #tpu.pipeline_mode<synchronous>, transform_indices = @transform_4, window_bounds = array<i64: 1, 64>}, {pipeline_mode = #tpu.pipeline_mode<synchronous>, transform_indices = @transform_5, window_bounds = array<i64: 2, 32>}, {transform_indices = @transform_6, window_bounds = array<i64: 1, 16, 32>}]} {
    %0 = tpu.iota {dimensions = array<i32: 1>} : vector<16x8xi32>
    %c0 = arith.constant 0 : index
    %c0_0 = arith.constant 0 : index
    %1 = vector.load %arg2[%c0, %c0_0] : memref<16x1xi32, #tpu.memory_space<vmem>>, vector<16x1xi32>
    %2 = vector.broadcast %1 : vector<16x1xi32> to vector<16x8xi32>
    %3 = arith.cmpi eq, %2, %0 : vector<16x8xi32>
    %4 = arith.extui %3 : vector<16x8xi1> to vector<16x8xi32>
    %5 = arith.sitofp %4 : vector<16x8xi32> to vector<16x8xf32>
    %c0_1 = arith.constant 0 : index
    %c0_2 = arith.constant 0 : index
    %c0_3 = arith.constant 0 : index
    %6 = vector.load %arg4[%c0_1, %c0_2, %c0_3] : memref<1x8x8xf32, #tpu.memory_space<vmem>>, vector<1x8x8xf32>
    %7 = vector.shape_cast %6 : vector<1x8x8xf32> to vector<8x8xf32>
    %cst = arith.constant dense<0.000000e+00> : vector<16x8xf32>
    %8 = tpu.matmul %5, %7, %cst {dimension_numbers = #tpu.dot_dimension_numbers<[1], [0], [0], [1], [0, 0, 1, 1], [], []>} : vector<16x8xf32>, vector<8x8xf32>, vector<16x8xf32> -> vector<16x8xf32>
    %c0_4 = arith.constant 0 : index
    %c0_5 = arith.constant 0 : index
    %c0_6 = arith.constant 0 : index
    %9 = vector.load %arg3[%c0_4, %c0_5, %c0_6] : memref<1x16x32xf32, #tpu.memory_space<vmem>>, vector<1x16x32xf32>
    %10 = vector.shape_cast %9 : vector<1x16x32xf32> to vector<16x32xf32>
    %cst_7 = arith.constant dense<0.000000e+00> : vector<16xf32>
    %11 = vector.multi_reduction <add>, %10, %cst_7 [1] : vector<16x32xf32> to vector<16xf32>
    %12 = vector.shape_cast %11 : vector<16xf32> to vector<16x1xf32>
    %cst_8 = arith.constant 3.125000e-02 : f32
    %13 = vector.broadcast %cst_8 : f32 to vector<16x1xf32>
    %14 = arith.mulf %12, %13 : vector<16x1xf32>
    %15 = arith.mulf %10, %10 : vector<16x32xf32>
    %cst_9 = arith.constant dense<0.000000e+00> : vector<16xf32>
    %16 = vector.multi_reduction <add>, %15, %cst_9 [1] : vector<16x32xf32> to vector<16xf32>
    %17 = vector.shape_cast %16 : vector<16xf32> to vector<16x1xf32>
    %cst_10 = arith.constant 3.125000e-02 : f32
    %18 = vector.broadcast %cst_10 : f32 to vector<16x1xf32>
    %19 = arith.mulf %17, %18 : vector<16x1xf32>
    %20 = arith.mulf %14, %14 : vector<16x1xf32>
    %21 = arith.subf %19, %20 : vector<16x1xf32>
    %cst_11 = arith.constant 0.000000e+00 : f32
    %22 = vector.broadcast %cst_11 : f32 to vector<16x1xf32>
    %23 = arith.maximumf %21, %22 : vector<16x1xf32>
    %cst_12 = arith.constant 9.99999974E-6 : f32
    %24 = vector.broadcast %cst_12 : f32 to vector<16x1xf32>
    %25 = arith.addf %23, %24 : vector<16x1xf32>
    %26 = math.rsqrt %25 : vector<16x1xf32>
    %c0_13 = arith.constant 0 : index
    %c0_14 = arith.constant 0 : index
    %27 = vector.load %arg7[%c0_13, %c0_14] : memref<2x32xf32, #tpu.memory_space<vmem>>, vector<1x32xf32>
    %c1 = arith.constant 1 : index
    %c0_15 = arith.constant 0 : index
    %28 = vector.load %arg7[%c1, %c0_15] : memref<2x32xf32, #tpu.memory_space<vmem>>, vector<1x32xf32>
    %29 = vector.broadcast %14 : vector<16x1xf32> to vector<16x32xf32>
    %30 = arith.subf %10, %29 : vector<16x32xf32>
    %31 = vector.broadcast %26 : vector<16x1xf32> to vector<16x32xf32>
    %32 = arith.mulf %30, %31 : vector<16x32xf32>
    %33 = vector.broadcast %27 : vector<1x32xf32> to vector<16x32xf32>
    %34 = arith.mulf %32, %33 : vector<16x32xf32>
    %35 = vector.broadcast %28 : vector<1x32xf32> to vector<16x32xf32>
    %36 = arith.addf %34, %35 : vector<16x32xf32>
    %c0_16 = arith.constant 0 : index
    %c0_17 = arith.constant 0 : index
    %37 = vector.load %arg5[%c0_16, %c0_17] : memref<8x64xf32, #tpu.memory_space<vmem>>, vector<8x64xf32>
    %cst_18 = arith.constant dense<0.000000e+00> : vector<16x64xf32>
    %38 = tpu.matmul %8, %37, %cst_18 {dimension_numbers = #tpu.dot_dimension_numbers<[1], [0], [0], [1], [0, 0, 1, 1], [], []>} : vector<16x8xf32>, vector<8x64xf32>, vector<16x64xf32> -> vector<16x64xf32>
    %c0_19 = arith.constant 0 : index
    %c0_20 = arith.constant 0 : index
    %39 = vector.load %arg6[%c0_19, %c0_20] : memref<1x64xf32, #tpu.memory_space<vmem>>, vector<1x64xf32>
    %40 = vector.broadcast %39 : vector<1x64xf32> to vector<16x64xf32>
    %41 = arith.addf %38, %40 : vector<16x64xf32>
    %42 = vector.extract_strided_slice %41 {offsets = [0, 0], sizes = [16, 32], strides = [1, 1]} : vector<16x64xf32> to vector<16x32xf32>
    %43 = vector.extract_strided_slice %41 {offsets = [0, 32], sizes = [16, 32], strides = [1, 1]} : vector<16x64xf32> to vector<16x32xf32>
    %44 = arith.mulf %36, %42 : vector<16x32xf32>
    %45 = arith.addf %44, %43 : vector<16x32xf32>
    %c0_21 = arith.constant 0 : index
    %c0_22 = arith.constant 0 : index
    %c0_23 = arith.constant 0 : index
    %46 = vector.load %arg8[%c0_21, %c0_22, %c0_23] : memref<1x16x32xf32, #tpu.memory_space<vmem>>, vector<1x16x32xf32>
    %47 = vector.shape_cast %46 : vector<1x16x32xf32> to vector<16x32xf32>
    %48 = vector.shape_cast %45 : vector<16x32xf32> to vector<1x16x32xf32>
    tpu.vector_store %arg8[%c0_21, %c0_22, %c0_23], %48 {strides = array<i32>} : memref<1x16x32xf32, #tpu.memory_space<vmem>>, vector<1x16x32xf32>,
    return
  }
  func.func @transform_0(%arg0: i32, %arg1: i32) -> (i32, i32) {
    %c0_i32 = arith.constant 0 : i32
    %c0_i32_0 = arith.constant 0 : i32
    return %arg1, %c0_i32 : i32, i32
  }
  func.func @transform_1(%arg0: i32, %arg1: i32) -> (i32, i32, i32) {
    %c0_i32 = arith.constant 0 : i32
    %c0_i32_0 = arith.constant 0 : i32
    return %arg0, %arg1, %c0_i32 : i32, i32, i32
  }
  func.func @transform_2(%arg0: i32, %arg1: i32) -> (i32, i32, i32) {
    %c0_i32 = arith.constant 0 : i32
    %c0_i32_0 = arith.constant 0 : i32
    %c0_i32_1 = arith.constant 0 : i32
    return %arg0, %c0_i32, %c0_i32_0 : i32, i32, i32
  }
  func.func @transform_3(%arg0: i32, %arg1: i32) -> (i32, i32) {
    %c0_i32 = arith.constant 0 : i32
    %c0_i32_0 = arith.constant 0 : i32
    %c0_i32_1 = arith.constant 0 : i32
    return %c0_i32, %c0_i32_0 : i32, i32
  }
  func.func @transform_4(%arg0: i32, %arg1: i32) -> (i32, i32) {
    %c0_i32 = arith.constant 0 : i32
    %c0_i32_0 = arith.constant 0 : i32
    %c0_i32_1 = arith.constant 0 : i32
    return %c0_i32, %c0_i32_0 : i32, i32
  }
  func.func @transform_5(%arg0: i32, %arg1: i32) -> (i32, i32) {
    %c0_i32 = arith.constant 0 : i32
    %c0_i32_0 = arith.constant 0 : i32
    %c0_i32_1 = arith.constant 0 : i32
    return %c0_i32, %c0_i32_0 : i32, i32
  }
  func.func @transform_6(%arg0: i32, %arg1: i32) -> (i32, i32, i32) {
    %c0_i32 = arith.constant 0 : i32
    %c0_i32_0 = arith.constant 0 : i32
    return %arg0, %arg1, %c0_i32 : i32, i32, i32
  }
}

</mosaic_0001>

<bundles_post_ra>
// kernel: spatial_norm.1
= control target key start
LH: loop header
LB: loop body
LE: loop exit
PB: predicated region body
PF: predicated region fallthrough
CT: control target
= control target key end

     0   :  { %11 = vsyncpa [#allocation3], 0  ;;  %s949_s0 = inlined_call_operand.vmem [shape: s32[16,1], index: 0, kind: input, shape index: {}]   ;;  %s950_s1 = inlined_call_operand.vmem [shape: f32[2,16,32], index: 1, kind: input, shape index: {}]   ;;  %s951_s2 = inlined_call_operand.vmem [shape: f32[2,8,8], index: 2, kind: input, shape index: {}]   ;;  %s952_s3 = inlined_call_operand.vmem [shape: f32[8,64], index: 3, kind: input, shape index: {}]   ;;  %s953_s4 = inlined_call_operand.vmem [shape: f32[1,64], index: 4, kind: input, shape index: {}]   ;;  %s954_s5 = inlined_call_operand.vmem [shape: f32[2,32], index: 5, kind: input, shape index: {}]   ;;  %s955_s6 = inlined_call_operand.hbm [shape: f32[2,16,32], index: 6, kind: output, shape index: {}]  }
   0x1   :  { %13 = vsyncpa [#allocation3 + $0x1], 0  ;;  %s813_s21 = smov 0   ;;  %s815_s22 = smov 0  }
   0x2   :  { %s817_s23 = smov 0   ;;  %s819_s24 = smov 0  }
   0x3   :  { %s821_s25 = smov 0   ;;  %s823_s26 = smov 0  }
   0x4 LB: > { %s600_s27 = sadd.s32 4294967295, %s771_s26   ;;  %s601_s28 = sadd.s32 4294967294, %s771_s26   ;;  %s771_s26 = sphi %s823_s26, %s19_s26   ;;  %s767_s25 = sphi %s821_s25, %s962_s25   ;;  %s763_s24 = sphi %s819_s24, %s961_s24   ;;  %s759_s23 = sphi %s817_s23, %s960_s23   ;;  %s755_s22 = sphi %s815_s22, %s959_s22   ;;  %s751_s21 = sphi %s813_s21, %s958_s21  }
   0x5   : > { %s31_s29 = sadd.s32 1, %s767_s25  ;;  %s183_s30 = sadd.s32 1, %s759_s23 }
   0x6   : > { %p33_p0 = scmp.ge.s32.totalorder %s31_s29, 2  ;;  %p193_p1 = scmp.ne.s32.totalorder %s759_s23, %s755_s22 }
   0x7   : > { %p194_p2 = scmp.eq.s32.totalorder %s600_s27, 1  ;;  %p199_p3 = scmp.ne.s32.totalorder %s755_s22, %s751_s21 }
   0x8   : > { %s964_s29 = smov (%p33_p0, %s31_s29), 0  ;;  %p200_p5 = scmp.eq.s32.totalorder %s601_s28, 1 }
   0x9   : > { %p853_p4 = por %p194_p2, %p193_p1  ;;  %s178_s8 = ssub.s32 %s767_s25, %s964_s29 }
   0xa   : > { %p605_p6 = scmp.ge.s32.totalorder %s771_s26, 1  ;;  %p181_p7 = scmp.eq.s32.totalorder %s178_s8, 0 }
   0xb   : > { %p860_p8 = por %p200_p5, %p199_p3  ;;  %p256_p9 = scmp.lt.s32.totalorder %s771_s26, 3 }
   0xc   : > { %s866_s10 = scalar_select %p181_p7, %s759_s23, %s183_s30  }
   0xd   : > { %p257_p10 = pnand %p605_p6, %p256_p9 }
   0xe   : > { %p306_p11 = scmp.lt.s32.totalorder (!%p257_p10), %s763_s24, 1  ;;  %s775_s14 = smov (!%p257_p10), 96  }
   0xf   : > { %260 = sbr.rel (%p257_p10) target bundleno = 526 (0x20e), region = 44  ;;  %s713_s18 = scalar_lea.hbm (!%p257_p10), %s955_s6, 32 }
  0x14   : > { %v323_v0 = vld [vmem:[%s949_s0 + $0x8] sm:$0xff]  ;;  %v773_v1 = vmov 0   ;;  %v322_v2 = vld [vmem:[%s949_s0] sm:$0xff]  ;;  %s307_s15 = scalar_select %p306_p11, %s763_s24, 1  ;;  %vm369_vm0 = vcmask 261120   ;;  %v320_v12 = vlaneseq  ;;  %vm337_vm1 = vcmask 64512  }
  0x15   : > { %685 = vset.pattern.permute.xlu0 %v773_v1  ;;  %v774_v15 = vmov 0.0   ;;  %v428_v19 = vld [vmem:[%s952_s3] sm:$0xff] }
  0x16   : > { %328 = vperm.xlu0 %685, %v323_v0   ;;  %s609_s16 = sshll.u32 %s307_s15, 3  ;;  %s621_s20 = sshll.u32 %s307_s15, 4  ;;  %v321_v13 = vand.u32 127, %v320_v12  ;;  %624 = vmatpush.msra.mxu3 %v428_v19  ;;  %v686_v22 = vld [vmem:[%s953_s4] ss:$0 sm:$0xff] }
  0x17   : > { %s318_s19 = scalar_lea.vmem %s951_s2, %s609_s16  ;;  %s313_s30 = scalar_lea.vmem %s950_s1, %s621_s20  ;;  %454 = vmatpush.msra.mxu1 %v428_v19  ;;  %v687_v58 = vld [vmem:[%s954_s5] ss:$0 sm:$0xff]  ;;  %v688_v61 = vld [vmem:[%s954_s5 + $0x1] ss:$0 sm:$0xff] }
  0x18   : > { %v336_v3 = vld [vmem:[%s318_s19] sm:$0xff]  ;;  %v888_v7 = vld [vmem:[%s313_s30 + $0x8] sm:$0xff]  ;;  %s296_s19 = sand.u32 1, %s755_s22   ;;  %s622_s20 = sshll.u32 %s763_s24, 4 }
  0x19   : > { %623 = vmatpush.msra.mxu2 %v336_v3  ;;  %359 = vmatpush.msra.mxu0 %v336_v3  ;;  %v882_v4 = vld [vmem:[%s313_s30] sm:$0xff]  ;;  %v379_v9 = vmul.f32 %v888_v7, %v888_v7  ;;  %v373_v10 = vsel %vm369_vm0, %v888_v7, 0.0  ;;  %s606_s27 = sshll.u32 %s296_s19, 4  ;;  %s490_s8 = scalar_lea.hbm %s955_s6, %s622_s20 }
  0x1a   : > { %v370_v5 = vsel %vm369_vm0, %v882_v4, 0.0  ;;  %v378_v6 = vmul.f32 %v882_v4, %v882_v4  ;;  %s298_s11 = scalar_lea.vmem [#allocation2], %s606_s27  ;;  %s493_s13 = sshll.u32 %s490_s8, 4  ;;  %s494_s13 = int_to_ptr.hbm [resolvable:$true] %s493_s13 }
  0x1b   : > { %371 = vadd.xlane.f32.xlu1 %v370_v5  ;;  %v383_v11 = vsel %vm369_vm0, %v379_v9, 0.0  ;;  %s491_s12 = sshll.u32 %s298_s11, 4  ;;  %s477_s24 = scalar_lea.sflag [#allocation3], %s296_s19  ;;  %s492_s12 = int_to_ptr.vmem [resolvable:$true] %s491_s12 }
  0x1c   : > { %v380_v8 = vsel %vm369_vm0, %v378_v6, 0.0 }
  0x1d   : > { %381 = vadd.xlane.f32.xlu2 %v380_v8 }
  0x1e   : > { %325 = vperm.xlu0 %685, %v322_v2  }
  0x23   : > { %374 = vadd.xlane.f32.xlu1 %v373_v10 }
  0x25   : > { %384 = vadd.xlane.f32.xlu2 %v383_v11 }
  0x88   : > { %v329_v14 = vpop.permute.xlu0 %328 }
  0x89   : > { %vm331_vm2 = vcmp.eq.s32.totalorder %v329_v14, %v321_v13 }
  0x8a   : > { %v611_v16 = vsel %vm331_vm2, 1.0, %v774_v15 }
  0x8b   : > { %613 = vmatmul.msk.f32.vlgmr.msra.gmra.mxu2 %vm337_vm1, %v611_v16 }
  0x8e   : > { %v372_v27 = vpop.xlane.xlu1 %371 }
  0x8f   : > { %v376_v29 = vmul.f32 0.03125, %v372_v27 }
  0x90   : > { %v326_v17 = vpop.permute.xlu0 %325  ;;  %v382_v28 = vpop.xlane.xlu2 %381 }
  0x91   : > { %vm330_vm3 = vcmp.eq.s32.totalorder %v326_v17, %v321_v13  ;;  %v388_v31 = vmul.f32 %v376_v29, %v376_v29  ;;  %v386_v32 = vmul.f32 0.03125, %v382_v28  ;;  %v418_v54 = vsub.f32 %v882_v4, %v376_v29 }
  0x92   : > { %v610_v18 = vsel %vm330_vm3, 1.0, %v774_v15 }
  0x93   : > { %612 = vmatmul.msk.f32.vlgmr.msra.gmra.mxu0 %vm337_vm1, %v610_v18  ;;  %v390_v35 = vsub.f32 %v386_v32, %v388_v31 }
  0x95   : > { %v392_v38 = vmax.f32 %v390_v35, 0.0 }
  0x96   : > { %v375_v30 = vpop.xlane.xlu1 %374 }
  0x97   : > { %v377_v33 = vmul.f32 0.03125, %v375_v30  ;;  %v394_v40 = vadd.f32 1e-05, %v392_v38 }
  0x98   : > { %v385_v34 = vpop.xlane.xlu2 %384 }
  0x99   : > { %v389_v36 = vmul.f32 %v377_v33, %v377_v33  ;;  %v387_v37 = vmul.f32 0.03125, %v385_v34  ;;  %689 = vrsqrt.f32 %v394_v40  ;;  %vm402_vm4 = vweird.f32 %v394_v40 }
  0x9a   : > { %v419_v57 = vsub.f32 %v888_v7, %v377_v33 }
  0x9b   : > { %v391_v39 = vsub.f32 %v387_v37, %v389_v36 }
  0x9d   : > { %v393_v41 = vmax.f32 %v391_v39, 0.0 }
  0x9f   : > { %v395_v42 = vadd.f32 1e-05, %v393_v41  ;;  %v690_v43 = vpop.eup %689 }
  0xa0   : > { %v397_v44 = vmul.f32 %v690_v43, %v394_v40  ;;  %vm403_vm5 = vweird.f32 %v690_v43 }
  0xa1   : > { %691 = vrsqrt.f32 %v395_v42  ;;  %vm404_vm6 = vmor %vm402_vm4, %vm403_vm5  ;;  %vm412_vm7 = vweird.f32 %v395_v42 }
  0xa2   : > { %v398_v46 = vmul.f32 %v690_v43, %v397_v44 }
  0xa4   : > { %v399_v48 = vmul.f32 0.5, %v398_v46 }
  0xa6   : > { %v400_v50 = vsub.f32 1.5, %v399_v48 }
  0xa7   : > { %v692_v45 = vpop.eup %691 }
  0xa8   : > { %v407_v47 = vmul.f32 %v692_v45, %v395_v42  ;;  %v401_v52 = vmul.f32 %v690_v43, %v400_v50  ;;  %vm413_vm8 = vweird.f32 %v692_v45 }
  0xa9   : > { %vm414_vm9 = vmor %vm412_vm7, %vm413_vm8 }
  0xaa   : > { %v408_v49 = vmul.f32 %v692_v45, %v407_v47  ;;  %v405_v56 = vsel %vm404_vm6, %v690_v43, %v401_v52 }
  0xab   : > { %v420_v59 = vmul.f32 %v418_v54, %v405_v56 }
  0xac   : > { %v409_v51 = vmul.f32 0.5, %v408_v49 }
  0xad   : > { %v423_v62 = vmul.f32 %v687_v58, %v420_v59 }
  0xae   : > { %v410_v53 = vsub.f32 1.5, %v409_v51 }
  0xaf   : > { %v426_v0 = vadd.f32 %v688_v61, %v423_v62 }
  0xb0   : > { %v411_v55 = vmul.f32 %v692_v45, %v410_v53 }
  0xb2   : > { %v415_v60 = vsel %vm414_vm9, %v692_v45, %v411_v55 }
  0xb3   : > { %v421_v63 = vmul.f32 %v419_v57, %v415_v60 }
  0xb5   : > { %v424_v1 = vmul.f32 %v687_v58, %v421_v63 }
  0xb7   : > { %v427_v3 = vadd.f32 %v688_v61, %v424_v1 }
 0x10e   : > { %v364_v20 = vpop.f32.mrf.mxu2 }
 0x10f   : > { %615 = vmatmul.msk.f32.vlgmr.msra.gmra.mxu3 %vm337_vm1, %v364_v20 }
 0x110   : > { %v361_v21 = vpop.f32.mrf.mxu0 }
 0x111   : > { %614 = vmatmul.msk.f32.vlgmr.msra.gmra.mxu1 %vm337_vm1, %v361_v21 }
 0x18e   : > { %v456_v23 = vpop.f32.mrf.mxu1 }
 0x18f   : > { %v457_v24 = vadd.f32 %v686_v22, %v456_v23 }
 0x191   : > { %466 = vrot.lane.b32.xlu0 %v457_v24, %s775_s14  ;;  %v462_v2 = vmul.f32 %v457_v24, %v426_v0 }
 0x192   : > { %v459_v25 = vpop.f32.mrf.mxu3 }
 0x193   : > { %v460_v26 = vadd.f32 %v686_v22, %v459_v25 }
 0x195   : > { %468 = vrot.lane.b32.xlu1 %v460_v26, %s775_s14  ;;  %v463_v6 = vmul.f32 %v460_v26, %v427_v3  ;;  %s707_s14 = sshra.s32 %s494_s13, 4  ;;  %s708_s14 = int_to_ptr.hbm [resolvable:$true] %s707_s14 }
 0x196   : > { %s709_s15 = scalar_lea.hbm %s708_s14, 16  ;;  %p714_p1 = scmp.lt.s32.totalorder %s708_s14, %s955_s6 }
 0x197   : > { %p710_p12 = scmp.ne.s32.totalorder %s708_s14, %s709_s15  ;;  %p715_p2 = scmp.lt.s32.totalorder %s713_s18, %s709_s15 }
 0x199   : > { %p711_p13 = pnand %p710_p12, %p853_p4  ;;  %p716_p3 = por %p715_p2, %p714_p1 }
 0x19b   : > { %p712_p0 = pneg %p711_p13 }
 0x19d   : > { %p717_p5 = pnand %p716_p3, %p712_p0 }
 0x203   : > { %v467_v4 = vpop.permute.xlu0 %466 }
 0x204   : > { %v472_v5 = vadd.f32 %v467_v4, %v462_v2 }
 0x206   : > { %474 = vst.msk [vmem:[%s298_s11] sm:$0xff] %vm369_vm0, %v472_v5 }
 0x207   : > { %v469_v7 = vpop.permute.xlu1 %468 }
 0x208   : > { %v473_v8 = vadd.f32 %v469_v7, %v463_v6 }
 0x20a   : > { %475 = vst.msk [vmem:[%s298_s11 + $0x8] sm:$0xff] %vm369_vm0, %v473_v8 }
 0x20b   : > { %720 = shalt.err (!%p717_p5)
}
 0x20c   : > { %s776_s19 = smov 128   ;;  %s777_s28 = smov 8  }
 0x20d   : > { %625 = dma.vmem_to_hbm [thread:$0]  (%p853_p4), %s492_s12, 256, %s494_s13, %s477_s24, %s776_s19, %s776_s19, %s777_s28  }
 0x20e PF: > { %p631_p6 = scmp.ge.s32.totalorder %s771_s26, 2  ;;  %s508_s30 = sand.u32 1, %s751_s21  }
 0x20f   : > { %s509_s8 = scalar_lea.sflag [#allocation3], %s508_s30 }
 0x210   : > { %p628_p7 = pnand %p631_p6, %p860_p8 }
 0x212   : > { %p629_p9 = pneg %p628_p7 }
 0x214   : > { %746 = dma.done.wait (%p629_p9), %s509_s8, 256  }
 0x215   : > { %748 = vsyncadd (%p629_p9), %s509_s8, 4294967040  ;;  %s19_s26 = sadd.s32 1, %s771_s26   ;;  %s958_s21 = smov %s755_s22 }
 0x216   : > { %p16_p10 = scmp.ge.s32.totalorder %s19_s26, 4   ;;  %s959_s22 = smov %s759_s23 }
 0x217   : > { %s960_s23 = smov %s866_s10  ;;  %s961_s24 = smov %s767_s25 }
 0x218   : > { %s962_s25 = smov %s964_s29  ;;  %18 = sbr.rel (!%p16_p10) target bundleno = 4 (0x4), region = 85 }
 0x21d   :  { %515 = vsyncpa [#allocation3], 1 }
 0x21e   :  { %517 = vsyncpa [#allocation3 + $0x1], 1 }

</bundles_post_ra>
